<compile_context>
chip_gen: v7x
topology: tpu7x:2x2x1
jax: 0.10.0
libtpu: 0.0.40
codegen_flags: <defaults>
</compile_context>

<pallas_src>
import functools

import jax
import jax.numpy as jnp
from jax import lax
from jax.experimental import pallas as pl
from jax.experimental.pallas import tpu as pltpu

_LANE = 128
_ACC_ROWS = 32           # accumulator rows: 4 f32 vregs -> 4 independent add chains
_MAX_TILE_ROWS = 4096    # 4096 * 128 * 4 B = 2 MiB per f32 input tile


def _cdiv(a, b):
    return -(-a // b)


# ----------------------------------------------------------------------------
# Kernel
# ----------------------------------------------------------------------------
def _wmse_sign_kernel(x_ref, y_ref, out_ref, *,
                      data_mean, wf_over_std, sign_penalty_factor,
                      tile_rows, num_red, total_rows):
    """Accumulates sum(weights * (sq_err + sign_penalty)) into the resident out block."""
    p = pl.program_id(0)
    t = pl.program_id(1)

    @pl.when(t == 0)
    def _():
        out_ref[...] = jnp.zeros_like(out_ref)

    # Stream native dtype (f32 or bf16) and widen in-register.
    x = x_ref[...].astype(jnp.float32)          # (tile_rows, 128)
    y = y_ref[...].astype(jnp.float32)

    diff = x - y
    adiff = jnp.abs(diff)
    weights = jnp.abs(y - data_mean) * wf_over_std + 1.0
    # Exact torch.sign(x) != torch.sign(y) (three sign classes, +/-0.0 correct)
    # using cheap compares instead of two jnp.sign lowerings.
    sign_differs = ((x < 0.0) != (y < 0.0)) | ((x == 0.0) != (y == 0.0))
    pen = jnp.where(sign_differs,
                    jnp.float32(sign_penalty_factor), jnp.float32(0.0))
    # weights * (diff^2 + |diff| * spf * mask), factored to save one op.
    wse = weights * (adiff * (adiff + pen))

    # Rows of this (nominal) tile that hold real data.  total_rows / tile_rows /
    # num_red are compile-time constants; the comparison is a scalar op.
    row_start = (p * num_red + t) * tile_rows
    valid = total_rows - row_start

    @pl.when(valid >= tile_rows)
    def _():  # full tile: unmasked VPU-only partial reduction onto (32,128)
        out_ref[...] += jnp.sum(wse.reshape(-1, _ACC_ROWS, _LANE), axis=0)

    @pl.when(valid < tile_rows)
    def _():  # boundary (or clamped duplicate) tile: mask stale rows to zero
        row_ids = lax.broadcasted_iota(jnp.int32, (tile_rows, _LANE), 0)
        wse_m = jnp.where(row_ids < valid, wse, 0.0)
        out_ref[...] += jnp.sum(wse_m.reshape(-1, _ACC_ROWS, _LANE), axis=0)


# ----------------------------------------------------------------------------
# Wrapper
# ----------------------------------------------------------------------------
def weighted_mse_loss_with_sign_penalty(inp, target, data_mean, data_std,
                                        weight_factor=1.0,
                                        sign_penalty_factor=1.0):
    """Pallas implementation of WeightedMSELossWithSignPenalty.forward (mean loss)."""
    if inp.shape != target.shape:
        raise ValueError("Input and target must have the same shape")
    n_elems = int(inp.size)
    if n_elems == 0:
        raise ValueError("empty input")
    # NOTE: data_std == 0 produces inf weights, exactly like the torch reference.

    x = jnp.ravel(inp)
    y = jnp.ravel(target)
    # Keep f32 / bf16 native (upcast happens in-register inside the kernel);
    # cast anything else to f32 up front.
    if x.dtype != jnp.float32 and x.dtype != jnp.bfloat16:
        x = x.astype(jnp.float32)
    if y.dtype != jnp.float32 and y.dtype != jnp.bfloat16:
        y = y.astype(jnp.float32)

    # --- lane-dense (rows, 128) layout, padding only when unavoidable ---------
    if n_elems >= _MAX_TILE_ROWS * _LANE:
        tile_rows = _MAX_TILE_ROWS
        # Pad only if the element count is lane-ragged; the common multiple-of-128
        # case takes the zero-copy reshape path and the ragged *row* tail is
        # masked inside the kernel instead of padded.
        n_padded = _cdiv(n_elems, _LANE) * _LANE
    else:
        # Small problem: one grid step; align to the accumulator granularity.
        align = _ACC_ROWS * _LANE
        n_padded = _cdiv(n_elems, align) * align
        tile_rows = n_padded // _LANE

    pad = n_padded - n_elems
    if pad:
        # Zero padding contributes exactly 0 (diff == 0, same sign class).
        x = jnp.pad(x, (0, pad))
        y = jnp.pad(y, (0, pad))
    rows = n_padded // _LANE
    x2 = x.reshape(rows, _LANE)
    y2 = y.reshape(rows, _LANE)

    num_tiles = _cdiv(rows, tile_rows)
    num_par = 2 if num_tiles >= 2 else 1        # megacore split on v7x
    num_red = _cdiv(num_tiles, num_par)
    last_tile = num_tiles - 1

    def in_index(p, t):
        # Clamp so an odd tile count never issues an out-of-range DMA; the
        # duplicated tile's contribution is masked to zero in the kernel.
        return (jnp.minimum(p * num_red + t, last_tile), 0)

    kernel = functools.partial(
        _wmse_sign_kernel,
        data_mean=float(data_mean),
        wf_over_std=float(weight_factor) / float(data_std),
        sign_penalty_factor=float(sign_penalty_factor),
        tile_rows=tile_rows,
        num_red=num_red,
        total_rows=rows,
    )

    in_spec = pl.BlockSpec((tile_rows, _LANE), in_index)

    partials = pl.pallas_call(
        kernel,
        out_shape=jax.ShapeDtypeStruct((num_par * _ACC_ROWS, _LANE), jnp.float32),
        grid_spec=pltpu.PrefetchScalarGridSpec(
            num_scalar_prefetch=0,
            grid=(num_par, num_red),
            in_specs=[in_spec, in_spec],
            out_specs=pl.BlockSpec((_ACC_ROWS, _LANE), lambda p, t: (p, 0)),
        ),
        compiler_params=pltpu.CompilerParams(
            dimension_semantics=("parallel", "arbitrary"),
            vmem_limit_bytes=48 * 1024 * 1024),
    )(x2, y2)

    # Final tiny cross-lane/sublane reduction + mean, once, outside the kernel.
    return jnp.sum(partials) / jnp.float32(n_elems)


# ----------------------------------------------------------------------------
# Reference (mirrors the torch forward in plain JAX)
# ----------------------------------------------------------------------------
def _reference_loss(inp, target, data_mean, data_std, weight_factor,
                    sign_penalty_factor):
    deviation = jnp.abs(target - data_mean)
    weights = 1.0 + (deviation / data_std) * weight_factor
    sq_err = (inp - target) ** 2
    penalty = jnp.where(jnp.sign(inp) != jnp.sign(target),
                        jnp.abs(inp - target) * sign_penalty_factor,
                        jnp.zeros_like(inp))
    return jnp.mean(weights * (sq_err + penalty))


# ----------------------------------------------------------------------------
# Main
# ----------------------------------------------------------------------------
if __name__ == "__main__":
    key = jax.random.PRNGKey(0)

    data_mean = 0.25
    data_std = 1.5
    weight_factor = 2.0
    sign_penalty_factor = 0.5

    ks = jax.random.split(key, 8)

    # Case 1: small 4-D tensor (batch=2, channels=4, 16x16 spatial) -> single tile.
    inp1 = jax.random.normal(ks[0], (2, 4, 16, 16), dtype=jnp.float32)
    tgt1 = jax.random.normal(ks[1], (2, 4, 16, 16), dtype=jnp.float32)

    # Case 2: odd size (not a multiple of 128) -> small-pad fallback path.
    inp2 = jax.random.normal(ks[2], (3, 5, 7), dtype=jnp.float32)
    tgt2 = jax.random.normal(ks[3], (3, 5, 7), dtype=jnp.float32)

    # Case 3: multi-tile path: 8200 rows -> 3 tiles (odd) exercising the
    # megacore split, the clamped duplicate grid slot and in-kernel row masking.
    inp3 = jax.random.normal(ks[4], (8200, 128), dtype=jnp.float32)
    tgt3 = jax.random.normal(ks[5], (8200, 128), dtype=jnp.float32)

    # Case 4: bf16 inputs streamed natively and upcast in-kernel.
    inp4 = jax.random.normal(ks[6], (2, 4, 16, 16), dtype=jnp.float32).astype(jnp.bfloat16)
    tgt4 = jax.random.normal(ks[7], (2, 4, 16, 16), dtype=jnp.float32).astype(jnp.bfloat16)

    loss1 = weighted_mse_loss_with_sign_penalty(
        inp1, tgt1, data_mean, data_std, weight_factor, sign_penalty_factor)
    loss2 = weighted_mse_loss_with_sign_penalty(
        inp2, tgt2, data_mean, data_std, weight_factor, sign_penalty_factor)
    loss3 = weighted_mse_loss_with_sign_penalty(
        inp3, tgt3, data_mean, data_std, weight_factor, sign_penalty_factor)
    loss4 = weighted_mse_loss_with_sign_penalty(
        inp4, tgt4, data_mean, data_std, weight_factor, sign_penalty_factor)
    jax.block_until_ready((loss1, loss2, loss3, loss4))

    ref1 = _reference_loss(inp1, tgt1, data_mean, data_std, weight_factor,
                           sign_penalty_factor)
    ref2 = _reference_loss(inp2, tgt2, data_mean, data_std, weight_factor,
                           sign_penalty_factor)
    ref3 = _reference_loss(inp3, tgt3, data_mean, data_std, weight_factor,
                           sign_penalty_factor)
    ref4 = _reference_loss(inp4.astype(jnp.float32), tgt4.astype(jnp.float32),
                           data_mean, data_std, weight_factor, sign_penalty_factor)

    assert jnp.allclose(loss1, ref1, rtol=1e-4, atol=1e-6), (loss1, ref1)
    assert jnp.allclose(loss2, ref2, rtol=1e-4, atol=1e-6), (loss2, ref2)
    assert jnp.allclose(loss3, ref3, rtol=1e-4, atol=1e-6), (loss3, ref3)
    assert jnp.allclose(loss4, ref4, rtol=1e-4, atol=1e-6), (loss4, ref4)

    print("KERNEL_OK")
</pallas_src>

<mosaic_0001>
module attributes {stable_mosaic.version = 11 : i64} {
  func.func @_wmse_sign_kernel(%arg0: i32, %arg1: i32, %arg2: memref<32x128xf32, #tpu.memory_space<vmem>>, %arg3: memref<32x128xf32, #tpu.memory_space<vmem>>, %arg4: memref<32x128xf32, #tpu.memory_space<vmem>>) attributes {dimension_semantics = [#tpu.dimension_semantics<parallel>, #tpu.dimension_semantics<arbitrary>], iteration_bounds = array<i64: 1, 1>, scalar_prefetch = 0 : i64, scratch_operands = 0 : i64, tpu.core_type = #tpu.core_type<tc>, window_params = [{transform_indices = @transform_0, window_bounds = array<i64: 32, 128>}, {transform_indices = @transform_1, window_bounds = array<i64: 32, 128>}, {transform_indices = @transform_2, window_bounds = array<i64: 32, 128>}]} {
    %c0_i32 = arith.constant 0 : i32
    %0 = arith.cmpi eq, %arg1, %c0_i32 : i32
    %1 = arith.extui %0 : i1 to i32
    %c0_i32_0 = arith.constant 0 : i32
    %2 = arith.cmpi ne, %1, %c0_i32_0 : i32
    scf.if %2 {
      %cst_17 = arith.constant 0.000000e+00 : f32
      %41 = vector.broadcast %cst_17 : f32 to vector<32x128xf32>
      %c0_18 = arith.constant 0 : index
      %c0_19 = arith.constant 0 : index
      %42 = vector.load %arg4[%c0_18, %c0_19] : memref<32x128xf32, #tpu.memory_space<vmem>>, vector<32x128xf32>
      tpu.vector_store %arg4[%c0_18, %c0_19], %41 {strides = array<i32>} : memref<32x128xf32, #tpu.memory_space<vmem>>, vector<32x128xf32>,
    } else {
    }
    %c0 = arith.constant 0 : index
    %c0_1 = arith.constant 0 : index
    %3 = vector.load %arg2[%c0, %c0_1] : memref<32x128xf32, #tpu.memory_space<vmem>>, vector<32x128xf32>
    %c0_2 = arith.constant 0 : index
    %c0_3 = arith.constant 0 : index
    %4 = vector.load %arg3[%c0_2, %c0_3] : memref<32x128xf32, #tpu.memory_space<vmem>>, vector<32x128xf32>
    %5 = arith.subf %3, %4 : vector<32x128xf32>
    %6 = math.absf %5 : vector<32x128xf32>
    %cst = arith.constant 2.500000e-01 : f32
    %7 = vector.broadcast %cst : f32 to vector<32x128xf32>
    %8 = arith.subf %4, %7 : vector<32x128xf32>
    %9 = math.absf %8 : vector<32x128xf32>
    %cst_4 = arith.constant 1.33333337 : f32
    %10 = vector.broadcast %cst_4 : f32 to vector<32x128xf32>
    %11 = arith.mulf %9, %10 : vector<32x128xf32>
    %cst_5 = arith.constant 1.000000e+00 : f32
    %12 = vector.broadcast %cst_5 : f32 to vector<32x128xf32>
    %13 = arith.addf %11, %12 : vector<32x128xf32>
    %cst_6 = arith.constant 0.000000e+00 : f32
    %14 = vector.broadcast %cst_6 : f32 to vector<32x128xf32>
    %15 = arith.cmpf olt, %3, %14 : vector<32x128xf32>
    %cst_7 = arith.constant 0.000000e+00 : f32
    %16 = vector.broadcast %cst_7 : f32 to vector<32x128xf32>
    %17 = arith.cmpf olt, %4, %16 : vector<32x128xf32>
    %18 = arith.xori %15, %17 : vector<32x128xi1>
    %cst_8 = arith.constant 0.000000e+00 : f32
    %19 = vector.broadcast %cst_8 : f32 to vector<32x128xf32>
    %20 = arith.cmpf oeq, %3, %19 : vector<32x128xf32>
    %cst_9 = arith.constant 0.000000e+00 : f32
    %21 = vector.broadcast %cst_9 : f32 to vector<32x128xf32>
    %22 = arith.cmpf oeq, %4, %21 : vector<32x128xf32>
    %23 = arith.xori %20, %22 : vector<32x128xi1>
    %24 = arith.ori %18, %23 : vector<32x128xi1>
    %cst_10 = arith.constant 5.000000e-01 : f32
    %cst_11 = arith.constant 0.000000e+00 : f32
    %25 = vector.broadcast %cst_10 : f32 to vector<32x128xf32>
    %26 = vector.broadcast %cst_11 : f32 to vector<32x128xf32>
    %27 = arith.select %24, %25, %26 : vector<32x128xi1>, vector<32x128xf32>
    %28 = arith.addf %6, %27 : vector<32x128xf32>
    %29 = arith.mulf %6, %28 : vector<32x128xf32>
    %30 = arith.mulf %13, %29 : vector<32x128xf32>
    %c1_i32 = arith.constant 1 : i32
    %31 = arith.muli %arg0, %c1_i32 : i32
    %32 = arith.addi %31, %arg1 : i32
    %c32_i32 = arith.constant 32 : i32
    %33 = arith.muli %32, %c32_i32 : i32
    %c32_i32_12 = arith.constant 32 : i32
    %34 = arith.subi %c32_i32_12, %33 : i32
    %c32_i32_13 = arith.constant 32 : i32
    %35 = arith.cmpi sge, %34, %c32_i32_13 : i32
    %36 = arith.extui %35 : i1 to i32
    %c0_i32_14 = arith.constant 0 : i32
    %37 = arith.cmpi ne, %36, %c0_i32_14 : i32
    scf.if %37 {
      %c0_17 = arith.constant 0 : index
      %c0_18 = arith.constant 0 : index
      %41 = vector.load %arg4[%c0_17, %c0_18] : memref<32x128xf32, #tpu.memory_space<vmem>>, vector<32x128xf32>
      %42 = vector.shape_cast %30 : vector<32x128xf32> to vector<1x32x128xf32>
      %cst_19 = arith.constant dense<0.000000e+00> : vector<32x128xf32>
      %43 = vector.multi_reduction <add>, %42, %cst_19 [0] : vector<1x32x128xf32> to vector<32x128xf32>
      %44 = arith.addf %41, %43 : vector<32x128xf32>
      %c0_20 = arith.constant 0 : index
      %c0_21 = arith.constant 0 : index
      %45 = vector.load %arg4[%c0_20, %c0_21] : memref<32x128xf32, #tpu.memory_space<vmem>>, vector<32x128xf32>
      tpu.vector_store %arg4[%c0_20, %c0_21], %44 {strides = array<i32>} : memref<32x128xf32, #tpu.memory_space<vmem>>, vector<32x128xf32>,
    } else {
    }
    %c32_i32_15 = arith.constant 32 : i32
    %38 = arith.cmpi slt, %34, %c32_i32_15 : i32
    %39 = arith.extui %38 : i1 to i32
    %c0_i32_16 = arith.constant 0 : i32
    %40 = arith.cmpi ne, %39, %c0_i32_16 : i32
    scf.if %40 {
      %41 = tpu.iota {dimensions = array<i32: 0>} : vector<32x128xi32>
      %42 = vector.broadcast %34 : i32 to vector<32x128xi32>
      %43 = arith.cmpi slt, %41, %42 : vector<32x128xi32>
      %cst_17 = arith.constant 0.000000e+00 : f32
      %44 = vector.broadcast %cst_17 : f32 to vector<32x128xf32>
      %45 = arith.select %43, %30, %44 : vector<32x128xi1>, vector<32x128xf32>
      %c0_18 = arith.constant 0 : index
      %c0_19 = arith.constant 0 : index
      %46 = vector.load %arg4[%c0_18, %c0_19] : memref<32x128xf32, #tpu.memory_space<vmem>>, vector<32x128xf32>
      %47 = vector.shape_cast %45 : vector<32x128xf32> to vector<1x32x128xf32>
      %cst_20 = arith.constant dense<0.000000e+00> : vector<32x128xf32>
      %48 = vector.multi_reduction <add>, %47, %cst_20 [0] : vector<1x32x128xf32> to vector<32x128xf32>
      %49 = arith.addf %46, %48 : vector<32x128xf32>
      %c0_21 = arith.constant 0 : index
      %c0_22 = arith.constant 0 : index
      %50 = vector.load %arg4[%c0_21, %c0_22] : memref<32x128xf32, #tpu.memory_space<vmem>>, vector<32x128xf32>
      tpu.vector_store %arg4[%c0_21, %c0_22], %49 {strides = array<i32>} : memref<32x128xf32, #tpu.memory_space<vmem>>, vector<32x128xf32>,
    } else {
    }
    return
  }
  func.func @transform_0(%arg0: i32, %arg1: i32) -> (i32, i32) {
    %c1_i32 = arith.constant 1 : i32
    %0 = arith.muli %arg0, %c1_i32 : i32
    %1 = arith.addi %0, %arg1 : i32
    %c0_i32 = arith.constant 0 : i32
    %2 = arith.minsi %1, %c0_i32 : i32
    %c0_i32_0 = arith.constant 0 : i32
    %c0_i32_1 = arith.constant 0 : i32
    return %2, %c0_i32_0 : i32, i32
  }
  func.func @transform_1(%arg0: i32, %arg1: i32) -> (i32, i32) {
    %c1_i32 = arith.constant 1 : i32
    %0 = arith.muli %arg0, %c1_i32 : i32
    %1 = arith.addi %0, %arg1 : i32
    %c0_i32 = arith.constant 0 : i32
    %2 = arith.minsi %1, %c0_i32 : i32
    %c0_i32_0 = arith.constant 0 : i32
    %c0_i32_1 = arith.constant 0 : i32
    return %2, %c0_i32_0 : i32, i32
  }
  func.func @transform_2(%arg0: i32, %arg1: i32) -> (i32, i32) {
    %c0_i32 = arith.constant 0 : i32
    %c0_i32_0 = arith.constant 0 : i32
    return %arg0, %c0_i32 : i32, i32
  }
}

</mosaic_0001>

<bundles_post_ra>
// kernel: tpu_custom_call.1
= control target key start
LH: loop header
LB: loop body
LE: loop exit
PB: predicated region body
PF: predicated region fallthrough
CT: control target
= control target key end

     0   :  { %7 = vsyncpa [#allocation3], 0  ;;  %s383_s0 = inlined_call_operand.hbm [shape: f32[32,128], index: 0, kind: input, shape index: {}]   ;;  %s384_s1 = inlined_call_operand.hbm [shape: f32[32,128], index: 1, kind: input, shape index: {}]   ;;  %s385_s2 = inlined_call_operand.hbm [shape: f32[32,128], index: 2, kind: output, shape index: {}]  }
   0x1   :  { %8 = vsyncpa [#allocation6], 0 }
   0x2   :  { %9 = vsyncpa [#allocation4], 0  ;;  %s305_s9 = smov [#allocation2]   ;;  %s233_s13 = scalar_lea.hbm %s383_s0, 512 }
   0x3   :  { %s21_s10 = sshll.u32 %s305_s9, 4  ;;  %p234_p0 = scmp.ne.s32.totalorder %s383_s0, %s233_s13  ;;  %s22_s10 = int_to_ptr.vmem [resolvable:$true] %s21_s10 }
   0x4   :  { %p237_p1 = scmp.lt.u32.totalorder %s233_s13, %s383_s0 }
   0x6   :  { %p239_p2 = pnand %p237_p1, %p234_p0 }
   0x8   :  { %242 = shalt.err (!%p239_p2)
}
   0x9   :  { %s243_s18 = scalar_lea.vmem %s22_s10, 512  ;;  %p248_p4 = scmp.lt.s32.totalorder %s22_s10, %s22_s10 }
   0xa   :  { %p244_p3 = scmp.ne.s32.totalorder %s22_s10, %s243_s18  ;;  %p249_p5 = scmp.lt.s32.totalorder %s243_s18, %s243_s18 }
   0xc   :  { %p250_p6 = por %p249_p5, %p248_p4 }
   0xe   :  { %p251_p7 = pnand %p250_p6, %p244_p3 }
  0x10   :  { %254 = shalt.err (!%p251_p7)
}
  0x11   :  { %s306_s19 = smov 128   ;;  %s307_s20 = smov 8  }
  0x12   :  { %27 = dma.hbm_to_vmem [thread:$0]  %s383_s0, 512, %s22_s10, [#allocation3], %s306_s19, %s306_s19, %s307_s20  }
  0x13   :  { %s308_s23 = smov [#allocation5]   ;;  %s255_s27 = scalar_lea.hbm %s384_s1, 512 }
  0x14   :  { %s39_s24 = sshll.u32 %s308_s23, 4  ;;  %p256_p8 = scmp.ne.s32.totalorder %s384_s1, %s255_s27  ;;  %s40_s24 = int_to_ptr.vmem [resolvable:$true] %s39_s24 }
  0x15   :  { %p259_p9 = scmp.lt.u32.totalorder %s255_s27, %s384_s1 }
  0x17   :  { %p261_p10 = pnand %p259_p9, %p256_p8 }
  0x19   :  { %264 = shalt.err (!%p261_p10)
}
  0x1a   :  { %s265_s4 = scalar_lea.vmem %s40_s24, 512  ;;  %p270_p12 = scmp.lt.s32.totalorder %s40_s24, %s40_s24 }
  0x1b   :  { %p266_p11 = scmp.ne.s32.totalorder %s40_s24, %s265_s4  ;;  %p271_p13 = scmp.lt.s32.totalorder %s265_s4, %s265_s4 }
  0x1d   :  { %p272_p0 = por %p271_p13, %p270_p12 }
  0x1f   :  { %p273_p1 = pnand %p272_p0, %p266_p11 }
  0x21   :  { %276 = shalt.err (!%p273_p1)
}
  0x22   :  { %45 = dma.hbm_to_vmem [thread:$0]  %s384_s1, 512, %s40_s24, [#allocation6], %s306_s19, %s306_s19, %s307_s20  }
  0x23   :  { %299 = dma.done.wait [#allocation3], 512  }
  0x24   :  { %300 = vsyncadd [#allocation3], 4294966784 }
  0x25   :  { %301 = dma.done.wait [#allocation6], 512  }
  0x26   :  { %302 = vsyncadd [#allocation6], 4294966784  ;;  %v68_v0 = vld [vmem:[#allocation2] sm:$0xff]  ;;  %v69_v2 = vld [vmem:[#allocation2 + $0x8] sm:$0xff]  ;;  %v309_v16 = vmov 0.0   ;;  %s310_s1 = smov [#allocation7]  }
  0x27   :  { %v72_v1 = vld [vmem:[#allocation5] sm:$0xff]  ;;  %vm100_vm0 = vcmp.lt.f32.partialorder %v68_v0, 0.0  ;;  %v73_v5 = vld [vmem:[#allocation5 + $0x8] sm:$0xff]  ;;  %vm112_vm3 = vcmp.eq.f32.partialorder %v68_v0, 0.0  ;;  %v70_v9 = vld [vmem:[#allocation2 + $0x10] sm:$0xff]  ;;  %vm101_vm6 = vcmp.lt.f32.partialorder %v69_v2, 0.0 }
  0x28   :  { %v76_v3 = vsub.f32 %v68_v0, %v72_v1  ;;  %v223_v4 = vadd.f32 -0.25, %v72_v1  ;;  %vm104_vm1 = vcmp.lt.f32.partialorder %v72_v1, 0.0  ;;  %vm116_vm4 = vcmp.eq.f32.partialorder %v72_v1, 0.0  ;;  %v74_v10 = vld [vmem:[#allocation5 + $0x10] sm:$0xff]  ;;  %v71_v23 = vld [vmem:[#allocation2 + $0x18] sm:$0xff]  ;;  %s206_s6 = sshll.u32 %s310_s1, 4  ;;  %s207_s6 = int_to_ptr.vmem [resolvable:$true] %s206_s6 }
  0x29   :  { %vm356_vm2 = vmxor %vm100_vm0, %vm104_vm1  ;;  %v77_v7 = vsub.f32 %v69_v2, %v73_v5  ;;  %v224_v8 = vadd.f32 -0.25, %v73_v5  ;;  %vm105_vm7 = vcmp.lt.f32.partialorder %v73_v5, 0.0  ;;  %vm113_vm9 = vcmp.eq.f32.partialorder %v69_v2, 0.0  ;;  %v75_v24 = vld [vmem:[#allocation5 + $0x18] sm:$0xff]  ;;  %s277_s7 = scalar_lea.vmem %s207_s6, 512  ;;  %p282_p3 = scmp.lt.s32.totalorder %s207_s6, %s207_s6 }
  0x2a   :  { %v80_v11 = vand.u32 2147483647, %v76_v3  ;;  %v88_v12 = vand.u32 2147483647, %v223_v4  ;;  %vm120_vm5 = vmxor %vm112_vm3, %vm116_vm4  ;;  %vm117_vm10 = vcmp.eq.f32.partialorder %v73_v5, 0.0  ;;  %v78_v19 = vsub.f32 %v70_v9, %v74_v10  ;;  %p278_p2 = scmp.ne.s32.totalorder %s207_s6, %s277_s7  ;;  %p283_p4 = scmp.lt.s32.totalorder %s277_s7, %s277_s7 }
  0x2b   :  { %vm124_vm8 = vmor %vm356_vm2, %vm120_vm5  ;;  %v81_v13 = vand.u32 2147483647, %v77_v7  ;;  %v89_v14 = vand.u32 2147483647, %v224_v8  ;;  %v225_v20 = vadd.f32 -0.25, %v74_v10  ;;  %vm102_vm13 = vcmp.lt.f32.partialorder %v70_v9, 0.0 }
  0x2c   :  { %v92_v15 = vmul.f32 1.3333334, %v88_v12  ;;  %v128_v17 = vsel %vm124_vm8, 0.5, %v309_v16  ;;  %vm362_vm11 = vmxor %vm101_vm6, %vm105_vm7  ;;  %vm106_vm14 = vcmp.lt.f32.partialorder %v74_v10, 0.0  ;;  %v82_v26 = vand.u32 2147483647, %v78_v19  ;;  %p284_p5 = por %p283_p4, %p282_p3 }
  0x2d   :  { %v132_v21 = vadd.f32 %v128_v17, %v80_v11  ;;  %v93_v22 = vmul.f32 1.3333334, %v89_v14  ;;  %vm121_vm12 = vmxor %vm113_vm9, %vm117_vm10  ;;  %v90_v27 = vand.u32 2147483647, %v225_v20  ;;  %vm114_vm0 = vcmp.eq.f32.partialorder %v70_v9, 0.0 }
  0x2e   :  { %v96_v25 = vadd.f32 1.0, %v92_v15  ;;  %vm125_vm15 = vmor %vm362_vm11, %vm121_vm12  ;;  %vm118_vm2 = vcmp.eq.f32.partialorder %v74_v10, 0.0  ;;  %v79_v33 = vsub.f32 %v71_v23, %v75_v24  ;;  %v226_v34 = vadd.f32 -0.25, %v75_v24  ;;  %p285_p6 = pnand %p284_p5, %p278_p2 }
  0x2f   :  { %v136_v28 = vmul.f32 %v132_v21, %v80_v11  ;;  %v97_v29 = vadd.f32 1.0, %v93_v22  ;;  %v129_v30 = vsel %vm125_vm15, 0.5, %v309_v16  ;;  %vm110_vm1 = vmxor %vm102_vm13, %vm106_vm14  ;;  %v94_v32 = vmul.f32 1.3333334, %v90_v27 }
  0x30   :  { %v133_v31 = vadd.f32 %v129_v30, %v81_v13  ;;  %vm122_vm3 = vmxor %vm114_vm0, %vm118_vm2  ;;  %vm103_vm5 = vcmp.lt.f32.partialorder %v71_v23, 0.0  ;;  %vm107_vm6 = vcmp.lt.f32.partialorder %v75_v24, 0.0  ;;  %vm115_vm7 = vcmp.eq.f32.partialorder %v71_v23, 0.0 }
  0x31   :  { %v140_v35 = vmul.f32 %v136_v28, %v96_v25  ;;  %vm126_vm4 = vmor %vm110_vm1, %vm122_vm3  ;;  %v98_v37 = vadd.f32 1.0, %v94_v32  ;;  %v83_v39 = vand.u32 2147483647, %v79_v33  ;;  %v91_v41 = vand.u32 2147483647, %v226_v34 }
  0x32   :  { %v137_v36 = vmul.f32 %v133_v31, %v81_v13  ;;  %v130_v38 = vsel %vm126_vm4, 0.5, %v309_v16  ;;  %vm111_vm8 = vmxor %vm103_vm5, %vm107_vm6  ;;  %vm119_vm9 = vcmp.eq.f32.partialorder %v75_v24, 0.0 }
  0x33   :  { %v134_v40 = vadd.f32 %v130_v38, %v82_v26  ;;  %vm123_vm10 = vmxor %vm115_vm7, %vm119_vm9  ;;  %163 = vst [vmem:[#allocation7] sm:$0xff] %v140_v35  ;;  %v95_v44 = vmul.f32 1.3333334, %v91_v41 }
  0x34   :  { %v141_v42 = vmul.f32 %v137_v36, %v97_v29  ;;  %vm127_vm11 = vmor %vm111_vm8, %vm123_vm10 }
  0x35   :  { %v138_v43 = vmul.f32 %v134_v40, %v82_v26  ;;  %v131_v45 = vsel %vm127_vm11, 0.5, %v309_v16  ;;  %v99_v47 = vadd.f32 1.0, %v95_v44 }
  0x36   :  { %v135_v48 = vadd.f32 %v131_v45, %v83_v39  ;;  %164 = vst [vmem:[#allocation7 + $0x8] sm:$0xff] %v141_v42 }
  0x37   :  { %v142_v46 = vmul.f32 %v138_v43, %v98_v37 }
  0x38   :  { %v139_v49 = vmul.f32 %v135_v48, %v83_v39 }
  0x39   :  { %165 = vst [vmem:[#allocation7 + $0x10] sm:$0xff] %v142_v46 }
  0x3a   :  { %v143_v50 = vmul.f32 %v139_v49, %v99_v47 }
  0x3c   :  { %166 = vst [vmem:[#allocation7 + $0x18] sm:$0xff] %v143_v50 }
  0x3d   :  { %288 = shalt.err (!%p285_p6)
}
  0x3e   :  { %s289_s10 = scalar_lea.hbm %s385_s2, 512 }
  0x3f   :  { %p290_p7 = scmp.ne.s32.totalorder %s385_s2, %s289_s10  ;;  %p293_p8 = scmp.lt.u32.totalorder %s289_s10, %s385_s2 }
  0x41   :  { %p295_p9 = pnand %p293_p8, %p290_p7 }
  0x43   :  { %298 = shalt.err (!%p295_p9)
}
  0x44   :  { %212 = dma.vmem_to_hbm [thread:$0]  %s207_s6, 512, %s385_s2, [#allocation4], %s306_s19, %s306_s19, %s307_s20  }
  0x45   :  { %303 = dma.done.wait [#allocation4], 512  }
  0x46   :  { %304 = vsyncadd [#allocation4], 4294966784 }
  0x47   :  { %216 = vsyncpa [#allocation3], 1 }
  0x48   :  { %217 = vsyncpa [#allocation6], 1 }
  0x49   :  { %218 = vsyncpa [#allocation4], 1 }

</bundles_post_ra>
